<compile_context>
chip_gen: v7x
topology: tpu7x:2x2x1
jax: 0.10.0
libtpu: 0.0.40
codegen_flags: <defaults>
</compile_context>

<pallas_src>
import functools

import jax
import jax.numpy as jnp
import numpy as np
from jax import lax
from jax.experimental import pallas as pl
from jax.experimental.pallas import tpu as pltpu


# ----------------------------- fused Pallas kernel ----------------------------

def _vgg_fused_kernel(x16_ref, w1_ref, b1_ref, w2_ref, b2_ref, io_ref, jo_ref,
                      f1_ref, f2_ref, pad_ref, *, ho, wo):
    """Whole VGGFeature forward (both requested feature maps), VMEM resident.

    x16_ref : (16*C0, L)  L = N*ho*wo.  Row (4a+b)*C0+cin holds the mean-
              subtracted zero-padded image sampled at (2*io+a, 2*jo+b) -- the
              4x4 phase decomposition of the padded input.
    w1_ref  : (4*C1, 16*C0) conv1 weights, phase-replicated, 1/std folded in.
    b1_ref  : (4*C1, 1)
    w2_ref  : (C2, 9*C1)    conv2 weights, K ordered (dy, dx, cin).
    b2_ref  : (C2, 1)
    io_ref  : (C1, L) int32 pooled-grid row index of each lane.
    jo_ref  : (C1, L) int32 pooled-grid col index of each lane.
    f1_ref  : (4*C1, L)     conv1+ReLU, rows (pool phase 2p+q | c), cols (n|io|jo).
    f2_ref  : (C2, L)       maxpool+conv2+ReLU, cols (n|io|jo).
    pad_ref : (C1, 128+L+128) f32 scratch: pooled activation with a dead border
              so the conv2 taps are plain static lane slices (no roll, no concat
              of narrow pieces).
    """
    c1 = pad_ref.shape[0]
    L = f2_ref.shape[1]
    base = 128
    mm_dtype = x16_ref.dtype

    # ---- conv1 (+ folded normalization) for all four pooling phases: 1 matmul.
    y1 = jnp.dot(w1_ref[...], x16_ref[...], preferred_element_type=jnp.float32)
    y1 = jnp.maximum(y1 + b1_ref[...], 0.0)                 # bias + ReLU (f32)
    f1_ref[...] = y1.astype(f1_ref.dtype)                   # dense, unmasked store

    # ---- 2x2 maxpool: max over the 4 phase row-blocks (tile-aligned sublanes).
    pooled = jnp.maximum(jnp.maximum(y1[0 * c1:1 * c1], y1[1 * c1:2 * c1]),
                         jnp.maximum(y1[2 * c1:3 * c1], y1[3 * c1:4 * c1]))

    # ---- conv2: scratch-ref padding + static lane-slice taps + 1 matmul.
    pad_ref[...] = jnp.zeros(pad_ref.shape, pad_ref.dtype)
    pad_ref[:, base:base + L] = pooled.astype(pad_ref.dtype)   # tile-aligned store

    io = io_ref[...]
    jo = jo_ref[...]
    taps = []
    for dy in range(3):
        row_ok = (io + (dy - 1) >= 0) & (io + (dy - 1) < ho)
        for dx in range(3):
            col_ok = (jo + (dx - 1) >= 0) & (jo + (dx - 1) < wo)
            off = (dy - 1) * wo + (dx - 1)
            raw = pad_ref[:, base + off:base + off + L]        # (C1, L) static slice
            taps.append(jnp.where(row_ok & col_ok, raw, 0.0))  # zero row/image wraps
    slab2 = jnp.concatenate(taps, axis=0).astype(mm_dtype)     # (9*C1, L), sublane stack

    y2 = jnp.dot(w2_ref[...], slab2, preferred_element_type=jnp.float32)
    y2 = jnp.maximum(y2 + b2_ref[...], 0.0)
    f2_ref[...] = y2.astype(f2_ref.dtype)                      # dense, unmasked store


# ----------------------------- wrapper -----------------------------------------

@functools.partial(jax.jit, static_argnames=("matmul_dtype",))
def vgg_two_stage_fused(x_nchw, w1, b1, w2, b2, mean, std, *,
                        matmul_dtype=jnp.float32):
    """normalize -> conv3x3+ReLU -> maxpool2x2 -> conv3x3+ReLU in one pallas_call."""
    n, c0, h, w = x_nchw.shape
    c1, c2 = w1.shape[0], w2.shape[0]
    assert h % 2 == 0 and w % 2 == 0 and w1.shape[1] == c0 and w2.shape[1] == c1
    ho, wo = h // 2, w // 2
    hw = ho * wo
    L = n * hw                       # batch folded onto the lane axis (toy sizes)
    assert wo + 1 <= 128             # conv2 tap offsets must fit the scratch border
    f32 = jnp.float32

    # ----- glue: layout plumbing only (fused by XLA, ~1.3x the input bytes) -----
    xm = x_nchw.astype(f32) - mean.reshape(1, c0, 1, 1)   # mean half of the norm fold
    xpad = jnp.pad(xm, ((0, 0), (0, 0), (1, 1), (1, 1)))  # SAME pad: (n, c0, h+2, w+2)
    # 4x4 phase decomposition of the padded image (a permutation, not a blowup):
    #   x16[(4a+b)*c0 + cin, ni*hw + io*wo + jo] = xpad[ni, cin, 2*io + a, 2*jo + b]
    wins = [xpad[:, :, a:a + 2 * ho - 1:2, b:b + 2 * wo - 1:2]
            for a in range(4) for b in range(4)]           # each (n, c0, ho, wo)
    x16 = (jnp.stack(wins, axis=0)                         # (16, n, c0, ho, wo)
              .transpose(0, 2, 1, 3, 4)                    # (16, c0, n, ho, wo)
              .reshape(16 * c0, L)
              .astype(matmul_dtype))

    # conv1 weights: 1/std folded in; one row-block per pooling phase (p, q); the
    # contraction axis is the 4x4 phase grid x cin, zero where a phase never taps.
    w1s = jnp.transpose(w1 / std.reshape(1, c0, 1, 1), (0, 2, 3, 1))   # (c1, 3, 3, c0)
    blocks = []
    for p in range(2):
        for q in range(2):
            wb = jnp.zeros((c1, 4, 4, c0), f32)
            wb = wb.at[:, p:p + 3, q:q + 3, :].set(w1s)
            blocks.append(wb.reshape(c1, 16 * c0))
    w1_all = jnp.concatenate(blocks, axis=0).astype(matmul_dtype)      # (4*c1, 16*c0)
    b1_all = jnp.tile(b1, 4).reshape(4 * c1, 1).astype(f32)

    w2_mat = jnp.transpose(w2, (0, 2, 3, 1)).reshape(c2, 9 * c1).astype(matmul_dtype)
    b2_col = b2.reshape(c2, 1).astype(f32)

    # Pooled-grid row/col index of every lane (index math hoisted out of the kernel).
    lane = jnp.arange(L, dtype=jnp.int32)
    sp = lane % hw
    io_idx = jnp.broadcast_to((sp // wo)[None, :], (c1, L))
    jo_idx = jnp.broadcast_to((sp % wo)[None, :], (c1, L))

    kernel = functools.partial(_vgg_fused_kernel, ho=ho, wo=wo)
    f1, f2 = pl.pallas_call(
        kernel,
        grid=(1,),                   # whole batch in one step (toy size: per-step
                                     # overhead removed; batch lives on the lane axis)
        in_specs=[
            pl.BlockSpec((16 * c0, L), lambda i: (0, 0)),
            pl.BlockSpec((4 * c1, 16 * c0), lambda i: (0, 0)),
            pl.BlockSpec((4 * c1, 1), lambda i: (0, 0)),
            pl.BlockSpec((c2, 9 * c1), lambda i: (0, 0)),
            pl.BlockSpec((c2, 1), lambda i: (0, 0)),
            pl.BlockSpec((c1, L), lambda i: (0, 0)),
            pl.BlockSpec((c1, L), lambda i: (0, 0)),
        ],
        out_specs=(
            pl.BlockSpec((4 * c1, L), lambda i: (0, 0)),
            pl.BlockSpec((c2, L), lambda i: (0, 0)),
        ),
        out_shape=(
            jax.ShapeDtypeStruct((4 * c1, L), f32),
            jax.ShapeDtypeStruct((c2, L), f32),
        ),
        scratch_shapes=[pltpu.VMEM((c1, 128 + L + 128), f32)],
        compiler_params=pltpu.CompilerParams(
            dimension_semantics=("arbitrary",)),
    )(x16, w1_all, b1_all, w2_mat, b2_col, io_idx, jo_idx)

    # ----- glue: channel-major kernel layouts back to the NCHW public layout ----
    feat1 = (f1.reshape(2, 2, c1, n, ho, wo)      # (p, q, c, n, io, jo)
               .transpose(3, 2, 4, 0, 5, 1)       # (n, c, io, p, jo, q)
               .reshape(n, c1, h, w))
    feat2 = f2.reshape(c2, n, ho, wo).transpose(1, 0, 2, 3)
    return feat1, feat2


# ----------------------------- VGGFeature --------------------------------------

class VGGFeaturePallas:
    """Pallas/TPU re-implementation of VGGFeature (synthetic small VGG stack).

    matmul_dtype: f32 by default (exact parity with the f32 reference).  For
    production set jnp.bfloat16 -- bf16 MXU inputs with f32 accumulation give
    ~3x MXU throughput and half the slab/weight bytes; it only relaxes the tight
    1e-4 parity tolerance.
    """

    def __init__(self, arch="vgg16", indices=(1, 4), use_fc=False,
                 normalize=True, min_max=(-1, 1), seed=0,
                 matmul_dtype=jnp.float32):
        assert arch in ("vgg16", "vgg16_bn", "vgg19", "vgg19_bn")
        cfg = [8, "M", 16]   # small synthetic channel config (same structure as VGG)
        key = jax.random.PRNGKey(seed)
        features = []
        cin = 3
        for v in cfg:
            if v == "M":
                features.append(("maxpool",))
            else:
                key, kw, kb = jax.random.split(key, 3)
                wgt = (jax.random.normal(kw, (v, cin, 3, 3), jnp.float32)
                       * (2.0 / (9 * cin)) ** 0.5)               # OIHW, like PyTorch
                bias = jax.random.normal(kb, (v,), jnp.float32) * 0.01
                features.append(("conv", wgt, bias))
                features.append(("relu",))
                cin = v
        self.features = features

        indices = list(indices)
        self.slices = []
        for i, j in zip([-1] + indices, indices + [None]):
            if j is None:
                break
            self.slices.append(features[i + 1: j + 1])

        self.use_fc = use_fc
        # TODO(synk): use_fc=True path (rest_layer + adaptive_avg_pool2d((7,7)) +
        #             fc6/fc7/fc8) is not implemented; this instance uses use_fc=False.

        mean = jnp.array([0.485, 0.456, 0.406], jnp.float32)
        std = jnp.array([0.229, 0.224, 0.225], jnp.float32)
        val_range = min_max[1] - min_max[0]
        self.mean = mean * val_range + min_max[0]
        self.std = std * val_range
        self.normalize = normalize
        self.matmul_dtype = matmul_dtype

    def _fused_params(self):
        if len(self.slices) != 2:
            return None
        s0, s1 = self.slices
        if ([l[0] for l in s0] != ["conv", "relu"]
                or [l[0] for l in s1] != ["maxpool", "conv", "relu"]):
            return None
        return s0[0][1], s0[0][2], s1[1][1], s1[1][2]

    def __call__(self, x_nchw):
        params = self._fused_params()
        if params is None:
            # TODO(synk): generic per-layer fallback for other indices/arch configs.
            raise NotImplementedError("fused kernel expects [conv,relu] + "
                                      "[maxpool,conv,relu] slice structure")
        w1, b1, w2, b2 = params
        if self.normalize:
            mean, std = self.mean, self.std
        else:
            mean = jnp.zeros_like(self.mean)
            std = jnp.ones_like(self.std)
        f1, f2 = vgg_two_stage_fused(x_nchw, w1, b1, w2, b2, mean, std,
                                     matmul_dtype=self.matmul_dtype)
        return [f1, f2], []


# ----------------------------- pure-JAX reference ------------------------------

def _reference(model, x_nchw):
    x = x_nchw.astype(jnp.float32)
    if model.normalize:
        x = (x - model.mean.reshape(1, 3, 1, 1)) / model.std.reshape(1, 3, 1, 1)
    feats = []
    out = x
    for sl in model.slices:
        for layer in sl:
            if layer[0] == "conv":
                out = lax.conv_general_dilated(
                    out, layer[1], (1, 1), "SAME",
                    dimension_numbers=("NCHW", "OIHW", "NCHW"))
                out = out + layer[2].reshape(1, -1, 1, 1)
            elif layer[0] == "relu":
                out = jnp.maximum(out, 0.0)
            elif layer[0] == "maxpool":
                out = lax.reduce_window(out, -jnp.inf, lax.max,
                                        (1, 1, 2, 2), (1, 1, 2, 2), "VALID")
        feats.append(out)
    return feats


# ----------------------------- main ---------------------------------------------

if __name__ == "__main__":
    key = jax.random.PRNGKey(0)
    x = jax.random.uniform(key, (2, 3, 16, 16), jnp.float32, minval=-1.0, maxval=1.0)

    # Exact-parity run (f32 MXU inputs).
    model = VGGFeaturePallas(arch="vgg16", indices=[1, 4], use_fc=False,
                             normalize=True, min_max=(-1, 1))
    features, fcs = model(x)
    features = [jax.block_until_ready(f) for f in features]

    ref_feats = _reference(model, x)
    assert fcs == []
    assert len(features) == len(ref_feats)
    for f, r in zip(features, ref_feats):
        assert f.shape == r.shape, (f.shape, r.shape)
        np.testing.assert_allclose(np.asarray(f), np.asarray(r),
                                   atol=1e-4, rtol=1e-4)

    # Production-mode smoke test (perf review): bf16 MXU inputs, f32 accumulation.
    model_bf16 = VGGFeaturePallas(arch="vgg16", indices=[1, 4], use_fc=False,
                                  normalize=True, min_max=(-1, 1),
                                  matmul_dtype=jnp.bfloat16)
    feats_bf16, _ = model_bf16(x)
    feats_bf16 = [jax.block_until_ready(f) for f in feats_bf16]
    for f, r in zip(feats_bf16, ref_feats):
        assert f.shape == r.shape
        assert bool(np.all(np.isfinite(np.asarray(f))))

    print("KERNEL_OK")
</pallas_src>

<mosaic_0001>
module attributes {stable_mosaic.version = 11 : i64} {
  func.func @_vgg_fused_kernel(%arg0: i32, %arg1: memref<48x128xf32, #tpu.memory_space<vmem>>, %arg2: memref<32x48xf32, #tpu.memory_space<vmem>>, %arg3: memref<32x1xf32, #tpu.memory_space<vmem>>, %arg4: memref<16x72xf32, #tpu.memory_space<vmem>>, %arg5: memref<16x1xf32, #tpu.memory_space<vmem>>, %arg6: memref<8x128xi32, #tpu.memory_space<vmem>>, %arg7: memref<8x128xi32, #tpu.memory_space<vmem>>, %arg8: memref<32x128xf32, #tpu.memory_space<vmem>>, %arg9: memref<16x128xf32, #tpu.memory_space<vmem>>, %arg10: memref<8x384xf32, #tpu.memory_space<vmem>>) attributes {dimension_semantics = [#tpu.dimension_semantics<arbitrary>], iteration_bounds = array<i64: 1>, scalar_prefetch = 0 : i64, scratch_operands = 1 : i64, tpu.core_type = #tpu.core_type<tc>, window_params = [{pipeline_mode = #tpu.pipeline_mode<synchronous>, transform_indices = @transform_0, window_bounds = array<i64: 48, 128>}, {pipeline_mode = #tpu.pipeline_mode<synchronous>, transform_indices = @transform_1, window_bounds = array<i64: 32, 48>}, {pipeline_mode = #tpu.pipeline_mode<synchronous>, transform_indices = @transform_2, window_bounds = array<i64: 32, 1>}, {pipeline_mode = #tpu.pipeline_mode<synchronous>, transform_indices = @transform_3, window_bounds = array<i64: 16, 72>}, {pipeline_mode = #tpu.pipeline_mode<synchronous>, transform_indices = @transform_4, window_bounds = array<i64: 16, 1>}, {pipeline_mode = #tpu.pipeline_mode<synchronous>, transform_indices = @transform_5, window_bounds = array<i64: 8, 128>}, {pipeline_mode = #tpu.pipeline_mode<synchronous>, transform_indices = @transform_6, window_bounds = array<i64: 8, 128>}, {pipeline_mode = #tpu.pipeline_mode<synchronous>, transform_indices = @transform_7, window_bounds = array<i64: 32, 128>}, {pipeline_mode = #tpu.pipeline_mode<synchronous>, transform_indices = @transform_8, window_bounds = array<i64: 16, 128>}]} {
    %c0 = arith.constant 0 : index
    %c0_0 = arith.constant 0 : index
    %0 = vector.load %arg2[%c0, %c0_0] : memref<32x48xf32, #tpu.memory_space<vmem>>, vector<32x48xf32>
    %c0_1 = arith.constant 0 : index
    %c0_2 = arith.constant 0 : index
    %1 = vector.load %arg1[%c0_1, %c0_2] : memref<48x128xf32, #tpu.memory_space<vmem>>, vector<48x128xf32>
    %cst = arith.constant dense<0.000000e+00> : vector<32x128xf32>
    %2 = tpu.matmul %0, %1, %cst {dimension_numbers = #tpu.dot_dimension_numbers<[1], [0], [0], [1], [0, 0, 1, 1], [], []>} : vector<32x48xf32>, vector<48x128xf32>, vector<32x128xf32> -> vector<32x128xf32>
    %c0_3 = arith.constant 0 : index
    %c0_4 = arith.constant 0 : index
    %3 = vector.load %arg3[%c0_3, %c0_4] : memref<32x1xf32, #tpu.memory_space<vmem>>, vector<32x1xf32>
    %4 = vector.broadcast %3 : vector<32x1xf32> to vector<32x128xf32>
    %5 = arith.addf %2, %4 : vector<32x128xf32>
    %cst_5 = arith.constant 0.000000e+00 : f32
    %6 = vector.broadcast %cst_5 : f32 to vector<32x128xf32>
    %7 = arith.maximumf %5, %6 : vector<32x128xf32>
    %c0_6 = arith.constant 0 : index
    %c0_7 = arith.constant 0 : index
    %8 = vector.load %arg8[%c0_6, %c0_7] : memref<32x128xf32, #tpu.memory_space<vmem>>, vector<32x128xf32>
    tpu.vector_store %arg8[%c0_6, %c0_7], %7 {strides = array<i32>} : memref<32x128xf32, #tpu.memory_space<vmem>>, vector<32x128xf32>,
    %9 = vector.extract_strided_slice %7 {offsets = [0, 0], sizes = [8, 128], strides = [1, 1]} : vector<32x128xf32> to vector<8x128xf32>
    %10 = vector.extract_strided_slice %7 {offsets = [8, 0], sizes = [8, 128], strides = [1, 1]} : vector<32x128xf32> to vector<8x128xf32>
    %11 = arith.maximumf %9, %10 : vector<8x128xf32>
    %12 = vector.extract_strided_slice %7 {offsets = [16, 0], sizes = [8, 128], strides = [1, 1]} : vector<32x128xf32> to vector<8x128xf32>
    %13 = vector.extract_strided_slice %7 {offsets = [24, 0], sizes = [8, 128], strides = [1, 1]} : vector<32x128xf32> to vector<8x128xf32>
    %14 = arith.maximumf %12, %13 : vector<8x128xf32>
    %15 = arith.maximumf %11, %14 : vector<8x128xf32>
    %cst_8 = arith.constant 0.000000e+00 : f32
    %16 = vector.broadcast %cst_8 : f32 to vector<8x384xf32>
    %c0_9 = arith.constant 0 : index
    %c0_10 = arith.constant 0 : index
    %17 = vector.load %arg10[%c0_9, %c0_10] : memref<8x384xf32, #tpu.memory_space<vmem>>, vector<8x384xf32>
    tpu.vector_store %arg10[%c0_9, %c0_10], %16 {strides = array<i32>} : memref<8x384xf32, #tpu.memory_space<vmem>>, vector<8x384xf32>,
    %c0_11 = arith.constant 0 : index
    %c128 = arith.constant 128 : index
    %18 = vector.load %arg10[%c0_11, %c128] : memref<8x384xf32, #tpu.memory_space<vmem>>, vector<8x128xf32>
    tpu.vector_store %arg10[%c0_11, %c128], %15 {strides = array<i32>} : memref<8x384xf32, #tpu.memory_space<vmem>>, vector<8x128xf32>,
    %c0_12 = arith.constant 0 : index
    %c0_13 = arith.constant 0 : index
    %19 = vector.load %arg6[%c0_12, %c0_13] : memref<8x128xi32, #tpu.memory_space<vmem>>, vector<8x128xi32>
    %c0_14 = arith.constant 0 : index
    %c0_15 = arith.constant 0 : index
    %20 = vector.load %arg7[%c0_14, %c0_15] : memref<8x128xi32, #tpu.memory_space<vmem>>, vector<8x128xi32>
    %c-1_i32 = arith.constant -1 : i32
    %21 = vector.broadcast %c-1_i32 : i32 to vector<8x128xi32>
    %22 = arith.addi %19, %21 : vector<8x128xi32>
    %c0_i32 = arith.constant 0 : i32
    %23 = vector.broadcast %c0_i32 : i32 to vector<8x128xi32>
    %24 = arith.cmpi sge, %22, %23 : vector<8x128xi32>
    %c-1_i32_16 = arith.constant -1 : i32
    %25 = vector.broadcast %c-1_i32_16 : i32 to vector<8x128xi32>
    %26 = arith.addi %19, %25 : vector<8x128xi32>
    %c8_i32 = arith.constant 8 : i32
    %27 = vector.broadcast %c8_i32 : i32 to vector<8x128xi32>
    %28 = arith.cmpi slt, %26, %27 : vector<8x128xi32>
    %29 = arith.andi %24, %28 : vector<8x128xi1>
    %c-1_i32_17 = arith.constant -1 : i32
    %30 = vector.broadcast %c-1_i32_17 : i32 to vector<8x128xi32>
    %31 = arith.addi %20, %30 : vector<8x128xi32>
    %c0_i32_18 = arith.constant 0 : i32
    %32 = vector.broadcast %c0_i32_18 : i32 to vector<8x128xi32>
    %33 = arith.cmpi sge, %31, %32 : vector<8x128xi32>
    %c-1_i32_19 = arith.constant -1 : i32
    %34 = vector.broadcast %c-1_i32_19 : i32 to vector<8x128xi32>
    %35 = arith.addi %20, %34 : vector<8x128xi32>
    %c8_i32_20 = arith.constant 8 : i32
    %36 = vector.broadcast %c8_i32_20 : i32 to vector<8x128xi32>
    %37 = arith.cmpi slt, %35, %36 : vector<8x128xi32>
    %38 = arith.andi %33, %37 : vector<8x128xi1>
    %c0_21 = arith.constant 0 : index
    %c119 = arith.constant 119 : index
    %39 = vector.load %arg10[%c0_21, %c119] : memref<8x384xf32, #tpu.memory_space<vmem>>, vector<8x128xf32>
    %40 = arith.andi %29, %38 : vector<8x128xi1>
    %cst_22 = arith.constant 0.000000e+00 : f32
    %41 = vector.broadcast %cst_22 : f32 to vector<8x128xf32>
    %42 = arith.select %40, %39, %41 : vector<8x128xi1>, vector<8x128xf32>
    %c0_i32_23 = arith.constant 0 : i32
    %43 = vector.broadcast %c0_i32_23 : i32 to vector<8x128xi32>
    %44 = arith.addi %20, %43 : vector<8x128xi32>
    %c0_i32_24 = arith.constant 0 : i32
    %45 = vector.broadcast %c0_i32_24 : i32 to vector<8x128xi32>
    %46 = arith.cmpi sge, %44, %45 : vector<8x128xi32>
    %c0_i32_25 = arith.constant 0 : i32
    %47 = vector.broadcast %c0_i32_25 : i32 to vector<8x128xi32>
    %48 = arith.addi %20, %47 : vector<8x128xi32>
    %c8_i32_26 = arith.constant 8 : i32
    %49 = vector.broadcast %c8_i32_26 : i32 to vector<8x128xi32>
    %50 = arith.cmpi slt, %48, %49 : vector<8x128xi32>
    %51 = arith.andi %46, %50 : vector<8x128xi1>
    %c0_27 = arith.constant 0 : index
    %c120 = arith.constant 120 : index
    %52 = vector.load %arg10[%c0_27, %c120] : memref<8x384xf32, #tpu.memory_space<vmem>>, vector<8x128xf32>
    %53 = arith.andi %29, %51 : vector<8x128xi1>
    %cst_28 = arith.constant 0.000000e+00 : f32
    %54 = vector.broadcast %cst_28 : f32 to vector<8x128xf32>
    %55 = arith.select %53, %52, %54 : vector<8x128xi1>, vector<8x128xf32>
    %c1_i32 = arith.constant 1 : i32
    %56 = vector.broadcast %c1_i32 : i32 to vector<8x128xi32>
    %57 = arith.addi %20, %56 : vector<8x128xi32>
    %c0_i32_29 = arith.constant 0 : i32
    %58 = vector.broadcast %c0_i32_29 : i32 to vector<8x128xi32>
    %59 = arith.cmpi sge, %57, %58 : vector<8x128xi32>
    %c1_i32_30 = arith.constant 1 : i32
    %60 = vector.broadcast %c1_i32_30 : i32 to vector<8x128xi32>
    %61 = arith.addi %20, %60 : vector<8x128xi32>
    %c8_i32_31 = arith.constant 8 : i32
    %62 = vector.broadcast %c8_i32_31 : i32 to vector<8x128xi32>
    %63 = arith.cmpi slt, %61, %62 : vector<8x128xi32>
    %64 = arith.andi %59, %63 : vector<8x128xi1>
    %c0_32 = arith.constant 0 : index
    %c121 = arith.constant 121 : index
    %65 = vector.load %arg10[%c0_32, %c121] : memref<8x384xf32, #tpu.memory_space<vmem>>, vector<8x128xf32>
    %66 = arith.andi %29, %64 : vector<8x128xi1>
    %cst_33 = arith.constant 0.000000e+00 : f32
    %67 = vector.broadcast %cst_33 : f32 to vector<8x128xf32>
    %68 = arith.select %66, %65, %67 : vector<8x128xi1>, vector<8x128xf32>
    %c0_i32_34 = arith.constant 0 : i32
    %69 = vector.broadcast %c0_i32_34 : i32 to vector<8x128xi32>
    %70 = arith.addi %19, %69 : vector<8x128xi32>
    %c0_i32_35 = arith.constant 0 : i32
    %71 = vector.broadcast %c0_i32_35 : i32 to vector<8x128xi32>
    %72 = arith.cmpi sge, %70, %71 : vector<8x128xi32>
    %c0_i32_36 = arith.constant 0 : i32
    %73 = vector.broadcast %c0_i32_36 : i32 to vector<8x128xi32>
    %74 = arith.addi %19, %73 : vector<8x128xi32>
    %c8_i32_37 = arith.constant 8 : i32
    %75 = vector.broadcast %c8_i32_37 : i32 to vector<8x128xi32>
    %76 = arith.cmpi slt, %74, %75 : vector<8x128xi32>
    %77 = arith.andi %72, %76 : vector<8x128xi1>
    %c-1_i32_38 = arith.constant -1 : i32
    %78 = vector.broadcast %c-1_i32_38 : i32 to vector<8x128xi32>
    %79 = arith.addi %20, %78 : vector<8x128xi32>
    %c0_i32_39 = arith.constant 0 : i32
    %80 = vector.broadcast %c0_i32_39 : i32 to vector<8x128xi32>
    %81 = arith.cmpi sge, %79, %80 : vector<8x128xi32>
    %c-1_i32_40 = arith.constant -1 : i32
    %82 = vector.broadcast %c-1_i32_40 : i32 to vector<8x128xi32>
    %83 = arith.addi %20, %82 : vector<8x128xi32>
    %c8_i32_41 = arith.constant 8 : i32
    %84 = vector.broadcast %c8_i32_41 : i32 to vector<8x128xi32>
    %85 = arith.cmpi slt, %83, %84 : vector<8x128xi32>
    %86 = arith.andi %81, %85 : vector<8x128xi1>
    %c0_42 = arith.constant 0 : index
    %c127 = arith.constant 127 : index
    %87 = vector.load %arg10[%c0_42, %c127] : memref<8x384xf32, #tpu.memory_space<vmem>>, vector<8x128xf32>
    %88 = arith.andi %77, %86 : vector<8x128xi1>
    %cst_43 = arith.constant 0.000000e+00 : f32
    %89 = vector.broadcast %cst_43 : f32 to vector<8x128xf32>
    %90 = arith.select %88, %87, %89 : vector<8x128xi1>, vector<8x128xf32>
    %c0_i32_44 = arith.constant 0 : i32
    %91 = vector.broadcast %c0_i32_44 : i32 to vector<8x128xi32>
    %92 = arith.addi %20, %91 : vector<8x128xi32>
    %c0_i32_45 = arith.constant 0 : i32
    %93 = vector.broadcast %c0_i32_45 : i32 to vector<8x128xi32>
    %94 = arith.cmpi sge, %92, %93 : vector<8x128xi32>
    %c0_i32_46 = arith.constant 0 : i32
    %95 = vector.broadcast %c0_i32_46 : i32 to vector<8x128xi32>
    %96 = arith.addi %20, %95 : vector<8x128xi32>
    %c8_i32_47 = arith.constant 8 : i32
    %97 = vector.broadcast %c8_i32_47 : i32 to vector<8x128xi32>
    %98 = arith.cmpi slt, %96, %97 : vector<8x128xi32>
    %99 = arith.andi %94, %98 : vector<8x128xi1>
    %c0_48 = arith.constant 0 : index
    %c128_49 = arith.constant 128 : index
    %100 = vector.load %arg10[%c0_48, %c128_49] : memref<8x384xf32, #tpu.memory_space<vmem>>, vector<8x128xf32>
    %101 = arith.andi %77, %99 : vector<8x128xi1>
    %cst_50 = arith.constant 0.000000e+00 : f32
    %102 = vector.broadcast %cst_50 : f32 to vector<8x128xf32>
    %103 = arith.select %101, %100, %102 : vector<8x128xi1>, vector<8x128xf32>
    %c1_i32_51 = arith.constant 1 : i32
    %104 = vector.broadcast %c1_i32_51 : i32 to vector<8x128xi32>
    %105 = arith.addi %20, %104 : vector<8x128xi32>
    %c0_i32_52 = arith.constant 0 : i32
    %106 = vector.broadcast %c0_i32_52 : i32 to vector<8x128xi32>
    %107 = arith.cmpi sge, %105, %106 : vector<8x128xi32>
    %c1_i32_53 = arith.constant 1 : i32
    %108 = vector.broadcast %c1_i32_53 : i32 to vector<8x128xi32>
    %109 = arith.addi %20, %108 : vector<8x128xi32>
    %c8_i32_54 = arith.constant 8 : i32
    %110 = vector.broadcast %c8_i32_54 : i32 to vector<8x128xi32>
    %111 = arith.cmpi slt, %109, %110 : vector<8x128xi32>
    %112 = arith.andi %107, %111 : vector<8x128xi1>
    %c0_55 = arith.constant 0 : index
    %c129 = arith.constant 129 : index
    %113 = vector.load %arg10[%c0_55, %c129] : memref<8x384xf32, #tpu.memory_space<vmem>>, vector<8x128xf32>
    %114 = arith.andi %77, %112 : vector<8x128xi1>
    %cst_56 = arith.constant 0.000000e+00 : f32
    %115 = vector.broadcast %cst_56 : f32 to vector<8x128xf32>
    %116 = arith.select %114, %113, %115 : vector<8x128xi1>, vector<8x128xf32>
    %c1_i32_57 = arith.constant 1 : i32
    %117 = vector.broadcast %c1_i32_57 : i32 to vector<8x128xi32>
    %118 = arith.addi %19, %117 : vector<8x128xi32>
    %c0_i32_58 = arith.constant 0 : i32
    %119 = vector.broadcast %c0_i32_58 : i32 to vector<8x128xi32>
    %120 = arith.cmpi sge, %118, %119 : vector<8x128xi32>
    %c1_i32_59 = arith.constant 1 : i32
    %121 = vector.broadcast %c1_i32_59 : i32 to vector<8x128xi32>
    %122 = arith.addi %19, %121 : vector<8x128xi32>
    %c8_i32_60 = arith.constant 8 : i32
    %123 = vector.broadcast %c8_i32_60 : i32 to vector<8x128xi32>
    %124 = arith.cmpi slt, %122, %123 : vector<8x128xi32>
    %125 = arith.andi %120, %124 : vector<8x128xi1>
    %c-1_i32_61 = arith.constant -1 : i32
    %126 = vector.broadcast %c-1_i32_61 : i32 to vector<8x128xi32>
    %127 = arith.addi %20, %126 : vector<8x128xi32>
    %c0_i32_62 = arith.constant 0 : i32
    %128 = vector.broadcast %c0_i32_62 : i32 to vector<8x128xi32>
    %129 = arith.cmpi sge, %127, %128 : vector<8x128xi32>
    %c-1_i32_63 = arith.constant -1 : i32
    %130 = vector.broadcast %c-1_i32_63 : i32 to vector<8x128xi32>
    %131 = arith.addi %20, %130 : vector<8x128xi32>
    %c8_i32_64 = arith.constant 8 : i32
    %132 = vector.broadcast %c8_i32_64 : i32 to vector<8x128xi32>
    %133 = arith.cmpi slt, %131, %132 : vector<8x128xi32>
    %134 = arith.andi %129, %133 : vector<8x128xi1>
    %c0_65 = arith.constant 0 : index
    %c135 = arith.constant 135 : index
    %135 = vector.load %arg10[%c0_65, %c135] : memref<8x384xf32, #tpu.memory_space<vmem>>, vector<8x128xf32>
    %136 = arith.andi %125, %134 : vector<8x128xi1>
    %cst_66 = arith.constant 0.000000e+00 : f32
    %137 = vector.broadcast %cst_66 : f32 to vector<8x128xf32>
    %138 = arith.select %136, %135, %137 : vector<8x128xi1>, vector<8x128xf32>
    %c0_i32_67 = arith.constant 0 : i32
    %139 = vector.broadcast %c0_i32_67 : i32 to vector<8x128xi32>
    %140 = arith.addi %20, %139 : vector<8x128xi32>
    %c0_i32_68 = arith.constant 0 : i32
    %141 = vector.broadcast %c0_i32_68 : i32 to vector<8x128xi32>
    %142 = arith.cmpi sge, %140, %141 : vector<8x128xi32>
    %c0_i32_69 = arith.constant 0 : i32
    %143 = vector.broadcast %c0_i32_69 : i32 to vector<8x128xi32>
    %144 = arith.addi %20, %143 : vector<8x128xi32>
    %c8_i32_70 = arith.constant 8 : i32
    %145 = vector.broadcast %c8_i32_70 : i32 to vector<8x128xi32>
    %146 = arith.cmpi slt, %144, %145 : vector<8x128xi32>
    %147 = arith.andi %142, %146 : vector<8x128xi1>
    %c0_71 = arith.constant 0 : index
    %c136 = arith.constant 136 : index
    %148 = vector.load %arg10[%c0_71, %c136] : memref<8x384xf32, #tpu.memory_space<vmem>>, vector<8x128xf32>
    %149 = arith.andi %125, %147 : vector<8x128xi1>
    %cst_72 = arith.constant 0.000000e+00 : f32
    %150 = vector.broadcast %cst_72 : f32 to vector<8x128xf32>
    %151 = arith.select %149, %148, %150 : vector<8x128xi1>, vector<8x128xf32>
    %c1_i32_73 = arith.constant 1 : i32
    %152 = vector.broadcast %c1_i32_73 : i32 to vector<8x128xi32>
    %153 = arith.addi %20, %152 : vector<8x128xi32>
    %c0_i32_74 = arith.constant 0 : i32
    %154 = vector.broadcast %c0_i32_74 : i32 to vector<8x128xi32>
    %155 = arith.cmpi sge, %153, %154 : vector<8x128xi32>
    %c1_i32_75 = arith.constant 1 : i32
    %156 = vector.broadcast %c1_i32_75 : i32 to vector<8x128xi32>
    %157 = arith.addi %20, %156 : vector<8x128xi32>
    %c8_i32_76 = arith.constant 8 : i32
    %158 = vector.broadcast %c8_i32_76 : i32 to vector<8x128xi32>
    %159 = arith.cmpi slt, %157, %158 : vector<8x128xi32>
    %160 = arith.andi %155, %159 : vector<8x128xi1>
    %c0_77 = arith.constant 0 : index
    %c137 = arith.constant 137 : index
    %161 = vector.load %arg10[%c0_77, %c137] : memref<8x384xf32, #tpu.memory_space<vmem>>, vector<8x128xf32>
    %162 = arith.andi %125, %160 : vector<8x128xi1>
    %cst_78 = arith.constant 0.000000e+00 : f32
    %163 = vector.broadcast %cst_78 : f32 to vector<8x128xf32>
    %164 = arith.select %162, %161, %163 : vector<8x128xi1>, vector<8x128xf32>
    %165 = tpu.concatenate %42, %55, %68, %90, %103, %116, %138, %151, %164 in 0 : vector<8x128xf32>, vector<8x128xf32>, vector<8x128xf32>, vector<8x128xf32>, vector<8x128xf32>, vector<8x128xf32>, vector<8x128xf32>, vector<8x128xf32>, vector<8x128xf32> -> vector<72x128xf32>
    %c0_79 = arith.constant 0 : index
    %c0_80 = arith.constant 0 : index
    %166 = vector.load %arg4[%c0_79, %c0_80] : memref<16x72xf32, #tpu.memory_space<vmem>>, vector<16x72xf32>
    %cst_81 = arith.constant dense<0.000000e+00> : vector<16x128xf32>
    %167 = tpu.matmul %166, %165, %cst_81 {dimension_numbers = #tpu.dot_dimension_numbers<[1], [0], [0], [1], [0, 0, 1, 1], [], []>} : vector<16x72xf32>, vector<72x128xf32>, vector<16x128xf32> -> vector<16x128xf32>
    %c0_82 = arith.constant 0 : index
    %c0_83 = arith.constant 0 : index
    %168 = vector.load %arg5[%c0_82, %c0_83] : memref<16x1xf32, #tpu.memory_space<vmem>>, vector<16x1xf32>
    %169 = vector.broadcast %168 : vector<16x1xf32> to vector<16x128xf32>
    %170 = arith.addf %167, %169 : vector<16x128xf32>
    %cst_84 = arith.constant 0.000000e+00 : f32
    %171 = vector.broadcast %cst_84 : f32 to vector<16x128xf32>
    %172 = arith.maximumf %170, %171 : vector<16x128xf32>
    %c0_85 = arith.constant 0 : index
    %c0_86 = arith.constant 0 : index
    %173 = vector.load %arg9[%c0_85, %c0_86] : memref<16x128xf32, #tpu.memory_space<vmem>>, vector<16x128xf32>
    tpu.vector_store %arg9[%c0_85, %c0_86], %172 {strides = array<i32>} : memref<16x128xf32, #tpu.memory_space<vmem>>, vector<16x128xf32>,
    return
  }
  func.func @transform_0(%arg0: i32) -> (i32, i32) {
    %c0_i32 = arith.constant 0 : i32
    %c0_i32_0 = arith.constant 0 : i32
    %c0_i32_1 = arith.constant 0 : i32
    return %c0_i32, %c0_i32_0 : i32, i32
  }
  func.func @transform_1(%arg0: i32) -> (i32, i32) {
    %c0_i32 = arith.constant 0 : i32
    %c0_i32_0 = arith.constant 0 : i32
    %c0_i32_1 = arith.constant 0 : i32
    return %c0_i32, %c0_i32_0 : i32, i32
  }
  func.func @transform_2(%arg0: i32) -> (i32, i32) {
    %c0_i32 = arith.constant 0 : i32
    %c0_i32_0 = arith.constant 0 : i32
    %c0_i32_1 = arith.constant 0 : i32
    return %c0_i32, %c0_i32_0 : i32, i32
  }
  func.func @transform_3(%arg0: i32) -> (i32, i32) {
    %c0_i32 = arith.constant 0 : i32
    %c0_i32_0 = arith.constant 0 : i32
    %c0_i32_1 = arith.constant 0 : i32
    return %c0_i32, %c0_i32_0 : i32, i32
  }
  func.func @transform_4(%arg0: i32) -> (i32, i32) {
    %c0_i32 = arith.constant 0 : i32
    %c0_i32_0 = arith.constant 0 : i32
    %c0_i32_1 = arith.constant 0 : i32
    return %c0_i32, %c0_i32_0 : i32, i32
  }
  func.func @transform_5(%arg0: i32) -> (i32, i32) {
    %c0_i32 = arith.constant 0 : i32
    %c0_i32_0 = arith.constant 0 : i32
    %c0_i32_1 = arith.constant 0 : i32
    return %c0_i32, %c0_i32_0 : i32, i32
  }
  func.func @transform_6(%arg0: i32) -> (i32, i32) {
    %c0_i32 = arith.constant 0 : i32
    %c0_i32_0 = arith.constant 0 : i32
    %c0_i32_1 = arith.constant 0 : i32
    return %c0_i32, %c0_i32_0 : i32, i32
  }
  func.func @transform_7(%arg0: i32) -> (i32, i32) {
    %c0_i32 = arith.constant 0 : i32
    %c0_i32_0 = arith.constant 0 : i32
    %c0_i32_1 = arith.constant 0 : i32
    return %c0_i32, %c0_i32_0 : i32, i32
  }
  func.func @transform_8(%arg0: i32) -> (i32, i32) {
    %c0_i32 = arith.constant 0 : i32
    %c0_i32_0 = arith.constant 0 : i32
    %c0_i32_1 = arith.constant 0 : i32
    return %c0_i32, %c0_i32_0 : i32, i32
  }
}

</mosaic_0001>

<bundles_post_ra>
// kernel: tile.8
= control target key start
LH: loop header
LB: loop body
LE: loop exit
PB: predicated region body
PF: predicated region fallthrough
CT: control target
= control target key end

     0   :  { %s22_s0 = inlined_call_operand.vmem [shape: f32[8], index: 0, kind: input, shape index: {}]   ;;  %s23_s1 = inlined_call_operand.vmem [shape: f32[4,8], index: 1, kind: output, shape index: {}]  }
   0x1   :  { %v4_v0 = vld [vmem:[%s22_s0] ss:$0 sm:$0xff] }
   0x2   :  { %5 = vst [vmem:[%s23_s1] sm:$0xf] %v4_v0 }

// kernel: tile.0
= control target key start
LH: loop header
LB: loop body
LE: loop exit
PB: predicated region body
PF: predicated region fallthrough
CT: control target
= control target key end

     0   :  { %s66_s8 = smov 125   ;;  %vm7_vm0 = vcmask 7168   ;;  %s67_s11 = smov 126   ;;  %s117_s0 = inlined_call_operand.vmem [shape: f32[4,8], index: 0, kind: input, shape index: {}]   ;;  %s118_s1 = inlined_call_operand.vmem [shape: f32[32,1], index: 1, kind: output, shape index: {}]  }
   0x1   :  { %v4_v0 = vld [vmem:[%s117_s0] sm:$0xf]  ;;  %s65_s0 = smov 127   ;;  %s68_s12 = smov 124  }
   0x2   :  { %5 = vst [vmem:[#allocation0] sm:$0xf] %v4_v0  ;;  %s69_s13 = smov 123   ;;  %s70_s14 = smov 122  }
   0x3   :  { %s71_s15 = smov 121  }
   0x9   :  { %v9_v1 = vld [vmem:[#allocation0] sm:$0xf]  }
   0xa   :  { %v21_v2 = vld [vmem:[#allocation0] sm:$0xf]   ;;  %10 = vrot.lane.b32.xlu0 %v9_v1, %s65_s0 }
   0xb   :  { %22 = vrot.lane.b32.xlu1 %v21_v2, %s66_s8  ;;  %v15_v3 = vld [vmem:[#allocation0] sm:$0xf]  }
   0xc   :  { %v27_v4 = vld [vmem:[#allocation0] sm:$0xf]  }
   0xd   :  { %v6_v5 = vld [vmem:[#allocation0] sm:$0xf]  }
   0xe   :  { %8 = vst.msk [vmem:[%s118_s1] ss:$8 sm:$0xf] %vm7_vm0, %v6_v5   ;;  %16 = vrot.lane.b32.xlu0 %v15_v3, %s67_s11  ;;  %v33_v6 = vld [vmem:[#allocation0] sm:$0xf]  }
   0xf   :  { %28 = vrot.lane.b32.xlu1 %v27_v4, %s68_s12  ;;  %v39_v7 = vld [vmem:[#allocation0] sm:$0xf]  }
  0x10   :  { %v45_v8 = vld [vmem:[#allocation0] sm:$0xf]  }
  0x12   :  { %34 = vrot.lane.b32.xlu0 %v33_v6, %s69_s13 }
  0x13   :  { %40 = vrot.lane.b32.xlu1 %v39_v7, %s70_s14 }
  0x16   :  { %46 = vrot.lane.b32.xlu0 %v45_v8, %s71_s15 }
  0x7c   :  { %v11_v9 = vpop.permute.xlu0 %10  }
  0x7d   :  { %v23_v10 = vpop.permute.xlu1 %22   ;;  %51 = vst.msk [vmem:[%s118_s1 + $0x1] ss:$8 sm:$0xf] %vm7_vm0, %v11_v9  }
  0x7e   :  { %53 = vst.msk [vmem:[%s118_s1 + $0x3] ss:$8 sm:$0xf] %vm7_vm0, %v23_v10  }
  0x80   :  { %v17_v11 = vpop.permute.xlu0 %16  }
  0x81   :  { %v29_v12 = vpop.permute.xlu1 %28   ;;  %52 = vst.msk [vmem:[%s118_s1 + $0x2] ss:$8 sm:$0xf] %vm7_vm0, %v17_v11  }
  0x82   :  { %54 = vst.msk [vmem:[%s118_s1 + $0x4] ss:$8 sm:$0xf] %vm7_vm0, %v29_v12  }
  0x84   :  { %v35_v13 = vpop.permute.xlu0 %34  }
  0x85   :  { %v41_v14 = vpop.permute.xlu1 %40   ;;  %55 = vst.msk [vmem:[%s118_s1 + $0x5] ss:$8 sm:$0xf] %vm7_vm0, %v35_v13  }
  0x86   :  { %56 = vst.msk [vmem:[%s118_s1 + $0x6] ss:$8 sm:$0xf] %vm7_vm0, %v41_v14  }
  0x88   :  { %v47_v15 = vpop.permute.xlu0 %46  }
  0x89   :  { %57 = vst.msk [vmem:[%s118_s1 + $0x7] ss:$8 sm:$0xf] %vm7_vm0, %v47_v15  }

// kernel: vgg_two_stage_fused.1
= control target key start
LH: loop header
LB: loop body
LE: loop exit
PB: predicated region body
PF: predicated region fallthrough
CT: control target
= control target key end

     0   :  { %vm62_vm0 = vcmask 392192   ;;  %v547_v3 = vmov 0   ;;  %v548_v37 = vmov 0.0   ;;  %s549_s16 = smov 8   ;;  %s550_s17 = smov 9   ;;  %vm803_vm1 = vcmask 588800   ;;  %s794_s0 = inlined_call_operand.vmem [shape: f32[48,128], index: 0, kind: input, shape index: {}]   ;;  %s795_s1 = inlined_call_operand.vmem [shape: f32[32,48], index: 1, kind: input, shape index: {}]   ;;  %s796_s2 = inlined_call_operand.vmem [shape: f32[32,1], index: 2, kind: input, shape index: {}]   ;;  %s797_s7 = inlined_call_operand.vmem [shape: f32[32,128], index: 7, kind: output, shape index: {0}]   ;;  %s798_s3 = inlined_call_operand.vmem [shape: f32[16,72], index: 3, kind: input, shape index: {}]   ;;  %s799_s4 = inlined_call_operand.vmem [shape: f32[16,1], index: 4, kind: input, shape index: {}]   ;;  %s800_s5 = inlined_call_operand.vmem [shape: s32[8,128], index: 5, kind: input, shape index: {}]   ;;  %s801_s6 = inlined_call_operand.vmem [shape: s32[8,128], index: 6, kind: input, shape index: {}]   ;;  %s802_s8 = inlined_call_operand.vmem [shape: f32[16,128], index: 8, kind: output, shape index: {1}]  }
   0x1   :  { %v32_v0 = vld [vmem:[%s794_s0] sm:$0xff]  ;;  %v33_v1 = vld [vmem:[%s794_s0 + $0x8] sm:$0xff]  ;;  %v34_v2 = vld [vmem:[%s794_s0 + $0x10] sm:$0xff]  ;;  %510 = vset.pattern.permute.xlu0 %v547_v3  ;;  %511 = vset.pattern.permute.xlu1 %v547_v3  ;;  %s551_s18 = smov 1   ;;  %s552_s19 = smov 7  }
   0x2   :  { %v464_v4 = vpack.c.bf16 %v33_v1, %v32_v0  ;;  %v35_v5 = vld [vmem:[%s794_s0 + $0x18] sm:$0xff]  ;;  %v36_v7 = vld [vmem:[%s794_s0 + $0x20] sm:$0xff]  ;;  %v37_v8 = vld [vmem:[%s794_s0 + $0x28] sm:$0xff]  ;;  %s553_s20 = smov 121   ;;  %s554_s21 = smov 127  }
   0x3   :  { %v468_v6 = vpack.c.bf16 %v35_v5, %v34_v2  ;;  %v28_v9 = vld [vmem:[%s795_s1] sm:$0xff]  ;;  %v40_v11 = vld [vmem:[%s796_s2 + $0x10] sm:$0xff]  ;;  %v472_v12 = vpack.c.bf16 %v37_v8, %v36_v7  ;;  %v39_v13 = vld [vmem:[%s796_s2 + $0x8] sm:$0xff]  ;;  %s555_s0 = smov 119   ;;  %s556_s23 = smov 120  }
   0x4   :  { %465 = vmatprep.subr.bf16.mxu0 %v464_v4  ;;  %437 = vmatprep.mubr.msk.f32.mxu0 %vm62_vm0, %v28_v9  ;;  %v38_v10 = vld [vmem:[%s796_s2] sm:$0xff]  ;;  %v41_v14 = vld [vmem:[%s796_s2 + $0x18] sm:$0xff]  ;;  %v29_v15 = vld [vmem:[%s795_s1 + $0x8] sm:$0xff] }
   0x5   :  { %467 = vmatpush3.bf16.msra.mxu0 %v464_v4  ;;  %44 = vperm.xlu0 %510, %v38_v10   ;;  %v30_v16 = vld [vmem:[%s795_s1 + $0x10] sm:$0xff]  ;;  %v31_v17 = vld [vmem:[%s795_s1 + $0x18] sm:$0xff]  ;;  %v281_v40 = vld [vmem:[%s798_s3] sm:$0xff] }
   0x6   :  { %469 = vmatprep.subr.bf16.mxu0 %v468_v6  ;;  %54 = vperm.xlu1 %511, %v40_v11   ;;  %v283_v41 = vld [vmem:[%s799_s4] sm:$0xff]  ;;  %v284_v42 = vld [vmem:[%s799_s4 + $0x8] sm:$0xff] }
   0x7   :  { %461 = vmatprep.mubr.msk.f32.mxu1 %vm803_vm1, %v281_v40  ;;  %v175_v43 = vld [vmem:[%s800_s5] sm:$0xff] }
   0x8   :  { %v176_v44 = vld [vmem:[%s801_s6] sm:$0xff]  ;;  %v177_v45 = vadd.s32 4294967295, %v175_v43  ;;  %vm223_vm13 = vcmp.ge.s32.totalorder %v175_v43, 0  ;;  %vm224_vm14 = vcmp.lt.s32.totalorder %v175_v43, 8  ;;  %v250_v55 = vadd.s32 1, %v175_v43 }
   0x9   :  { %471 = vmatpush3.bf16.msra.mxu0 %v468_v6  ;;  %49 = vperm.xlu0 %510, %v39_v13   ;;  %v181_v46 = vadd.s32 4294967295, %v176_v44  ;;  %v210_v47 = vadd.s32 1, %v176_v44  ;;  %vm198_vm8 = vcmp.ge.s32.totalorder %v176_v44, 0  ;;  %vm199_vm9 = vcmp.lt.s32.totalorder %v176_v44, 8 }
   0xa   :  { %473 = vmatprep.subr.bf16.mxu0 %v472_v12  ;;  %59 = vperm.xlu1 %511, %v41_v14   ;;  %vm178_vm2 = vcmp.ge.s32.totalorder %v177_v45, 0  ;;  %vm179_vm3 = vcmp.lt.s32.totalorder %v177_v45, 8  ;;  %vm693_vm15 = vmand %vm198_vm8, %vm199_vm9  ;;  %vm252_vm1 = vcmp.lt.s32.totalorder %v250_v55, 8 }
   0xb   :  { %vm182_vm4 = vcmp.ge.s32.totalorder %v181_v46, 0  ;;  %vm183_vm5 = vcmp.lt.s32.totalorder %v181_v46, 8  ;;  %vm681_vm6 = vmand %vm178_vm2, %vm179_vm3  ;;  %vm211_vm10 = vcmp.ge.s32.totalorder %v210_v47, 0  ;;  %vm212_vm11 = vcmp.lt.s32.totalorder %v210_v47, 8 }
   0xc   :  { %vm685_vm7 = vmand %vm182_vm4, %vm183_vm5  ;;  %vm194_vm3 = vcmask 72704   ;;  %vm206_vm5 = vcmask 64512  }
   0xd   :  { %475 = vmatpush3.bf16.msra.mxu0 %v472_v12  ;;  %vm187_vm12 = vmand %vm681_vm6, %vm685_vm7 }
   0xe   :  { %vm701_vm2 = vmand %vm223_vm13, %vm224_vm14  ;;  %vm219_vm13 = vcmask 56320   ;;  %vm251_vm14 = vcmp.ge.s32.totalorder %v250_v55, 0 }
   0xf   :  { %vm201_vm4 = vmand %vm681_vm6, %vm693_vm15 }
  0x10   :  { %438 = vmatmul.mubr.msk.f32.vlgmr.msra.gmra.mrb[0].mxu0 %vm62_vm0, %v29_v15  ;;  %vm226_vm9 = vmand %vm701_vm2, %vm685_vm7 }
  0x11   :  { %440 = vmatprep.mubr.msk.f32.mxu0 %vm62_vm0, %v30_v16 }
  0x14   :  { %441 = vmatmul.mubr.msk.f32.gmra.mrb[2].mxu0 %vm62_vm0, %v31_v17  ;;  %vm697_vm0 = vmand %vm211_vm10, %vm212_vm11  ;;  %vm231_vm10 = vcmask 7168  }
  0x15   :  { %vm214_vm8 = vmand %vm681_vm6, %vm697_vm0 }
  0x16   :  { %vm722_vm11 = vmpackc.low %vm201_vm4, %vm187_vm12  ;;  %vm246_vm4 = vcmask 1039360  }
  0x17   :  { %vm736_vm12 = vmpackc.low %vm226_vm9, %vm214_vm8  ;;  %vm268_vm9 = vcmask 982016  }
  0x18   :  { %vm239_vm6 = vmand %vm701_vm2, %vm697_vm0 }
  0x84   :  { %v45_v18 = vpop.permute.xlu0 %44 }
  0x85   :  { %v55_v19 = vpop.permute.xlu1 %54 }
  0x88   :  { %v50_v20 = vpop.permute.xlu0 %49 }
  0x89   :  { %v60_v26 = vpop.permute.xlu1 %59 }
  0xe3   :  { %v439_v21 = vpop.f32.mrb[0].mxu0 }
  0xe4   :  { %v147_v22 = vadd.f32 %v439_v21, %v50_v20  ;;  %v141_v23 = vpop.f32.mrb[1].mxu0 }
  0xe5   :  { %v142_v24 = vadd.f32 %v141_v23, %v45_v18 }
  0xe6   :  { %v161_v25 = vmax.f32 %v147_v22, 0.0 }
  0xe7   :  { %v160_v27 = vmax.f32 %v142_v24, 0.0  ;;  %v442_v28 = vpop.f32.mrb[2].mxu0 }
  0xe8   :  { %165 = vst [vmem:[%s797_s7 + $0x8] sm:$0xff] %v161_v25  ;;  %v157_v29 = vadd.f32 %v442_v28, %v60_v26  ;;  %v151_v30 = vpop.f32.mrb[3].mxu0 }
  0xe9   :  { %164 = vst [vmem:[%s797_s7] sm:$0xff] %v160_v27  ;;  %v168_v31 = vmax.f32 %v160_v27, %v161_v25  ;;  %v152_v32 = vadd.f32 %v151_v30, %v55_v19 }
  0xea   :  { %v163_v33 = vmax.f32 %v157_v29, 0.0  ;;  %v282_v29 = vld [vmem:[%s798_s3 + $0x8] sm:$0xff] }
  0xeb   :  { %v162_v34 = vmax.f32 %v152_v32, 0.0 }
  0xec   :  { %167 = vst [vmem:[%s797_s7 + $0x18] sm:$0xff] %v163_v33 }
  0xed   :  { %166 = vst [vmem:[%s797_s7 + $0x10] sm:$0xff] %v162_v34  ;;  %v169_v35 = vmax.f32 %v162_v34, %v163_v33 }
  0xef   :  { %v660_v36 = vmax.f32 %v168_v31, %v169_v35 }
  0xf1   :  { %v517_v38 = vpack.i.bf16 %v660_v36, %v548_v37  ;;  %v537_v39 = vpack.i.bf16 %v548_v37, %v660_v36 }
  0xf3   :  { %518 = vrot.lane.b32.xlu1 %v517_v38, %s549_s16  ;;  %513 = vrot.lane.b32.xlu0 %v517_v38, %s550_s17 }
  0xf7   :  { %528 = vrot.lane.b32.xlu1 %v517_v38, %s551_s18  ;;  %523 = vrot.lane.b32.xlu0 %v517_v38, %s552_s19 }
  0xfb   :  { %538 = vrot.lane.b32.xlu1 %v537_v39, %s553_s20  ;;  %533 = vrot.lane.b32.xlu0 %v537_v39, %s554_s21 }
  0xff   :  { %273 = vrot.lane.b32.xlu1 %v660_v36, %s555_s0  ;;  %543 = vrot.lane.b32.xlu0 %v537_v39, %s556_s23 }
 0x103   :  { %287 = vperm.xlu1 %511, %v283_v41   ;;  %275 = vrot.lane.b32.xlu0 %v548_v37, %s555_s0 }
 0x107   :  { %292 = vperm.xlu0 %510, %v284_v42  }
 0x165   :  { %v519_v53 = vpop.permute.xlu1 %518  ;;  %v514_v54 = vpop.permute.xlu0 %513 }
 0x166   :  { %v521_v56 = vunpack.i.h.bf16 %v519_v53  ;;  %v520_v57 = vunpack.i.l.bf16 %v519_v53  ;;  %v516_v58 = vunpack.i.h.bf16 %v514_v54  ;;  %v515_v59 = vunpack.i.l.bf16 %v514_v54 }
 0x168   :  { %v195_v60 = vsel %vm194_vm3, %v515_v59, %v516_v58  ;;  %v207_v61 = vsel %vm206_vm5, %v520_v57, %v521_v56  ;;  %vm235_vm3 = vmand %vm701_vm2, %vm693_vm15  ;;  %vm259_vm2 = vcmask 990208  }
 0x169   :  { %v529_v63 = vpop.permute.xlu1 %528  ;;  %v524_v0 = vpop.permute.xlu0 %523  ;;  %v476_v1 = vpack.c.bf16 %v207_v61, %v195_v60  ;;  %vm755_vm5 = vmand %vm251_vm14, %vm252_vm1 }
 0x16a   :  { %v531_v2 = vunpack.i.h.bf16 %v529_v63  ;;  %v530_v3 = vunpack.i.l.bf16 %v529_v63  ;;  %v526_v4 = vunpack.i.h.bf16 %v524_v0  ;;  %v525_v5 = vunpack.i.l.bf16 %v524_v0  ;;  %vm761_vm8 = vmpackc.low %vm239_vm6, %vm235_vm3 }
 0x16b   :  { %478 = vmatprep.subr.msk.bf16.mxu1 %vm722_vm11, %v476_v1  ;;  %vm254_vm1 = vmand %vm755_vm5, %vm685_vm7 }
 0x16c   :  { %v232_v7 = vsel %vm231_vm10, %v530_v3, %v531_v2  ;;  %v220_v8 = vsel %vm219_vm13, %v525_v5, %v526_v4  ;;  %481 = vmatpush3.bf16.msk.msra.mxu1 %vm722_vm11, %v476_v1  ;;  %vm263_vm10 = vmand %vm755_vm5, %vm693_vm15  ;;  %vm277_vm11 = vcmask 973824   ;;  %vm822_vm15 = vcmask 588800  }
 0x16d   :  { %v482_v9 = vpack.c.bf16 %v232_v7, %v220_v8  ;;  %v539_v10 = vpop.permute.xlu1 %538  ;;  %v534_v11 = vpop.permute.xlu0 %533  ;;  %vm495_vm7 = vmpackc.low %vm263_vm10, %vm254_vm1 }
 0x16e   :  { %v536_v13 = vunpack.i.h.bf16 %v534_v11  ;;  %v535_v14 = vunpack.i.l.bf16 %v534_v11  ;;  %v541_v16 = vunpack.i.h.bf16 %v539_v10  ;;  %v540_v17 = vunpack.i.l.bf16 %v539_v10  ;;  %vm272_vm13 = vmand %vm755_vm5, %vm697_vm0 }
 0x16f   :  { %484 = vmatprep.subr.msk.bf16.mxu1 %vm736_vm12, %v482_v9 }
 0x170   :  { %v247_v18 = vsel %vm246_vm4, %v535_v14, %v536_v13  ;;  %487 = vmatpush3.bf16.msk.msra.mxu1 %vm736_vm12, %v482_v9  ;;  %v260_v23 = vsel %vm259_vm2, %v540_v17, %v541_v16 }
 0x171   :  { %v488_v19 = vpack.c.bf16 %v247_v18, %v660_v36  ;;  %v544_v20 = vpop.permute.xlu0 %543  ;;  %v274_v27 = vpop.permute.xlu1 %273 }
 0x172   :  { %v546_v21 = vunpack.i.h.bf16 %v544_v20  ;;  %v545_v22 = vunpack.i.l.bf16 %v544_v20 }
 0x173   :  { %490 = vmatprep.subr.msk.bf16.mxu1 %vm761_vm8, %v488_v19 }
 0x174   :  { %v269_v24 = vsel %vm268_vm9, %v545_v22, %v546_v21  ;;  %493 = vmatpush3.bf16.msk.msra.mxu1 %vm761_vm8, %v488_v19 }
 0x175   :  { %v494_v25 = vpack.c.bf16 %v269_v24, %v260_v23  ;;  %v276_v26 = vpop.permute.xlu0 %275 }
 0x176   :  { %v278_v28 = vsel %vm277_vm11, %v274_v27, %v276_v26 }
 0x177   :  { %496 = vmatprep.subr.msk.bf16.mxu1 %vm495_vm7, %v494_v25 }
 0x178   :  { %499 = vmatpush3.bf16.msk.msra.mxu1 %vm495_vm7, %v494_v25 }
 0x179   :  { %459 = vmatprep.subr.msk.mxu1 %vm272_vm13, %v278_v28 }
 0x17c   :  { %460 = vmatpush3.msk.msra.mxu1 %vm272_vm13, %v278_v28 }
 0x17d   :  { %462 = vmatmul.mubr.msk.f32.vlgmr.msra.gmra.mrb[0].mxu1 %vm822_vm15, %v282_v29 }
 0x182   :  { %v288_v32 = vpop.permute.xlu1 %287 }
 0x186   :  { %v293_v30 = vpop.permute.xlu0 %292 }
 0x250   :  { %v463_v31 = vpop.f32.mrb[0].mxu1 }
 0x251   :  { %v374_v33 = vadd.f32 %v463_v31, %v293_v30  ;;  %v368_v34 = vpop.f32.mrb[1].mxu1 }
 0x252   :  { %v369_v35 = vadd.f32 %v368_v34, %v288_v32 }
 0x253   :  { %v378_v36 = vmax.f32 %v374_v33, 0.0 }
 0x254   :  { %v377_v37 = vmax.f32 %v369_v35, 0.0 }
 0x255   :  { %380 = vst [vmem:[%s802_s8 + $0x8] sm:$0xff] %v378_v36 }
 0x256   :  { %379 = vst [vmem:[%s802_s8] sm:$0xff] %v377_v37 }

</bundles_post_ra>
